<compile_context>
chip_gen: v5e
topology: v5e:2x2
jax: 0.10.0
libtpu: 0.0.40
codegen_flags: <defaults>
</compile_context>

<pallas_src>
import numpy as np
import jax
import jax.numpy as jnp
from jax.experimental import pallas as pl
from jax.experimental.pallas import tpu as pltpu

C = 64   # channels_num (adjacency in the reference is hard-coded 64x64)
K = 2    # graph_convolution_kernel
B = 2    # batch
T = 64   # time samples  (B*T = 128 -> lane-dense slabs)


# ---------------------------------------------------------------------------
# Fused Pallas kernel: channel attention + graph convolution + ReLU
# ---------------------------------------------------------------------------
def _fused_gcn_kernel(evp_ref, evt_ref, eye_ref, w1_ref, b1_ref, w2_ref,
                      b2_ref, sel_ref, x_ref, out_ref):
    """All operands are full-array VMEM blocks (no grid).

      evp (K*C, C)   stacked ev @ diag(p_k)          (host-precomputed, param-only)
      evt (C, C)     ev.T
      eye (C, C)     identity (used to fold attention into the eigenbasis)
      w1  (4, C), b1 (4, 1), w2 (C, 4), b2 (C, 1)    channel-attention MLP
      sel (B*T, B)   time-mean selector, 1/T folded in (host-precomputed)
      x   (C, B*T)   input slab
      out (K*C, B*T) output slab (lane- and sublane-dense)
    """
    X = x_ref[...]                                                    # (C, B*T)

    # ---- channel attention, kept with C on sublanes (no in-kernel transposes) ----
    xm = jnp.dot(X, sel_ref[...], preferred_element_type=jnp.float32)          # (C, B)
    h = jnp.tanh(jnp.dot(w1_ref[...], xm, preferred_element_type=jnp.float32)
                 + b1_ref[...])                                                 # (4, B)
    hmean = jnp.mean(h, axis=1, keepdims=True)                                  # (4, 1)
    # mean over batch commutes with the affine fc2: att = w2 @ mean_b(h) + b2
    att = (jnp.dot(w2_ref[...], hmean, preferred_element_type=jnp.float32)
           + b2_ref[...])                                                       # (C, 1)

    # ---- fold attention into the eigenbasis: ev^T @ diag(att)  (B*T-independent) ----
    evt_att = jnp.dot(evt_ref[...], att * eye_ref[...],
                      preferred_element_type=jnp.float32)                       # (C, C)

    # ---- graph convolution:  y = [ev@diag(p_k)]_k  @  (ev^T diag(att) X) ----
    z = jnp.dot(evt_att, X, preferred_element_type=jnp.float32)                 # (C, B*T)
    y = jnp.dot(evp_ref[...], z, preferred_element_type=jnp.float32)            # (K*C, B*T)
    out_ref[...] = jnp.maximum(y, 0.0)                                          # ReLU


# ---------------------------------------------------------------------------
# Wrapper
# ---------------------------------------------------------------------------
@jax.jit
def my_graph_convolution(x, e_vectors, graph_kernel_param, w1, b1, w2, b2):
    """Forward pass of MyGraphConvolution (channel attention enabled)."""
    Bn, _, Cn, Tn = x.shape
    Kn = graph_kernel_param.shape[0]
    bt = Bn * Tn

    # --- host/XLA-side layout plumbing (parameter-sized or unavoidable I/O layout) ---
    # x/out transposes are kept only because the public contract is (B,1,C,T)->(B,K,C,T).
    x_slab = jnp.transpose(x.reshape(Bn, Cn, Tn), (1, 0, 2)).reshape(Cn, bt)     # (C, B*T)
    # EVP[k*C + i, j] = ev[i, j] * p_k[j]  ==  (ev @ diag(p_k)) stacked over k
    evp = (e_vectors[None, :, :]
           * graph_kernel_param.reshape(Kn, 1, Cn)).reshape(Kn * Cn, Cn)         # (K*C, C)
    evt = e_vectors.T                                                            # (C, C)
    eye = jnp.eye(Cn, dtype=jnp.float32)                                         # (C, C)
    sel = jnp.asarray(np.repeat(np.eye(Bn, dtype=np.float32), Tn, axis=0) / Tn)  # (B*T, B)
    b1c = b1.reshape(-1, 1)                                                      # (4, 1)
    b2c = b2.reshape(-1, 1)                                                      # (C, 1)

    flops = (2 * Cn * Cn * bt               # z matmul
             + 2 * (Kn * Cn) * Cn * bt      # stacked graph-conv matmul
             + 2 * Cn * Cn * Cn             # attention fold into eigenbasis
             + 2 * Cn * bt * Bn             # time-mean selector matmul
             + 2 * 4 * Cn * Bn + 2 * Cn * 4)  # attention MLP
    bytes_accessed = 4 * (Kn * Cn * Cn + 2 * Cn * Cn + 4 * Cn + 4 + Cn * 4 + Cn
                          + bt * Bn + Cn * bt + Kn * Cn * bt)

    vmem = pltpu.MemorySpace.VMEM
    out_slab = pl.pallas_call(
        _fused_gcn_kernel,
        out_shape=jax.ShapeDtypeStruct((Kn * Cn, bt), jnp.float32),
        in_specs=[pl.BlockSpec(memory_space=vmem)] * 9,
        out_specs=pl.BlockSpec(memory_space=vmem),
        cost_estimate=pl.CostEstimate(flops=flops, transcendentals=4 * Bn,
                                      bytes_accessed=bytes_accessed),
    )(evp, evt, eye, w1, b1c, w2, b2c, sel, x_slab)

    # (K*C, B*T) -> (K, C, B, T) -> (B, K, C, T)
    return jnp.transpose(out_slab.reshape(Kn, Cn, Bn, Tn), (2, 0, 1, 3))


# ---------------------------------------------------------------------------
# Pure-JAX reference (mirrors the PyTorch forward exactly)
# ---------------------------------------------------------------------------
def torch_reference(x, e_vectors, graph_kernel_param, w1, b1, w2, b2):
    # channel attention
    xm = jnp.mean(jnp.transpose(x, (0, 1, 3, 2)), axis=2).reshape(x.shape[0], -1)  # (B, C)
    h = jnp.tanh(xm @ w1.T + b1)
    att = (h @ w2.T + b2).mean(axis=0)                          # (C,)
    # graph kernel
    kern = graph_kernel_param * jnp.eye(C, dtype=jnp.float32)   # (K, C, C)
    gk = e_vectors @ kern @ e_vectors.T                         # (K, C, C)
    gk = att * gk[None]                                         # (1, K, C, C)
    y = jnp.matmul(gk, x)                                       # (B, K, C, T)
    return jnp.maximum(y, 0.0)


if __name__ == "__main__":
    # --- deterministic synthetic graph ---
    # TODO(synk): edges.npy not available; use a deterministic ring + skip graph instead.
    edges = [(i, (i + 1) % 64) for i in range(64)] + [(i, (i + 5) % 64) for i in range(64)]
    adjacency = np.zeros((64, 64))
    for a, bb in edges:
        adjacency[a][bb] = 1
        adjacency[bb][a] = 1
    adjacency = np.sign(adjacency + np.eye(C))
    adjacency = np.sum(adjacency, axis=0) * np.eye(64) - adjacency
    _, e_vectors_np = np.linalg.eig(adjacency)
    e_vectors = jnp.asarray(np.real(e_vectors_np), dtype=jnp.float32)

    # --- deterministic parameters ---
    key = jax.random.PRNGKey(0)
    k_param, k_w1, k_b1, k_w2, k_b2, k_x = jax.random.split(key, 6)
    graph_kernel_param = jax.random.normal(k_param, (K, 1, C), dtype=jnp.float32)
    w1 = jax.random.normal(k_w1, (4, C), dtype=jnp.float32) * 0.1   # fc1: Linear(C, 4)
    b1 = jax.random.normal(k_b1, (4,), dtype=jnp.float32) * 0.1
    w2 = jax.random.normal(k_w2, (C, 4), dtype=jnp.float32) * 0.1   # fc2: Linear(4, C)
    b2 = jax.random.normal(k_b2, (C,), dtype=jnp.float32) * 0.1

    # --- input ---
    x = jax.random.normal(k_x, (B, 1, C, T), dtype=jnp.float32)

    out = my_graph_convolution(x, e_vectors, graph_kernel_param, w1, b1, w2, b2)
    out = jax.block_until_ready(out)

    ref = torch_reference(x, e_vectors, graph_kernel_param, w1, b1, w2, b2)
    assert out.shape == (B, K, C, T)
    np.testing.assert_allclose(np.asarray(out), np.asarray(ref), rtol=1e-4, atol=1e-4)

    print("KERNEL_OK")
</pallas_src>

<mosaic_0001>
module attributes {stable_mosaic.version = 11 : i64} {
  func.func @_fused_gcn_kernel(%arg0: memref<128x64xf32, #tpu.memory_space<vmem>>, %arg1: memref<64x64xf32, #tpu.memory_space<vmem>>, %arg2: memref<64x64xf32, #tpu.memory_space<vmem>>, %arg3: memref<4x64xf32, #tpu.memory_space<vmem>>, %arg4: memref<4x1xf32, #tpu.memory_space<vmem>>, %arg5: memref<64x4xf32, #tpu.memory_space<vmem>>, %arg6: memref<64x1xf32, #tpu.memory_space<vmem>>, %arg7: memref<128x2xf32, #tpu.memory_space<vmem>>, %arg8: memref<64x128xf32, #tpu.memory_space<vmem>>, %arg9: memref<128x128xf32, #tpu.memory_space<vmem>>) attributes {dimension_semantics = [], scalar_prefetch = 0 : i64, scratch_operands = 0 : i64, tpu.core_type = #tpu.core_type<tc>} {
    %c0 = arith.constant 0 : index
    %c0_0 = arith.constant 0 : index
    %0 = vector.load %arg8[%c0, %c0_0] : memref<64x128xf32, #tpu.memory_space<vmem>>, vector<64x128xf32>
    %c0_1 = arith.constant 0 : index
    %c0_2 = arith.constant 0 : index
    %1 = vector.load %arg7[%c0_1, %c0_2] : memref<128x2xf32, #tpu.memory_space<vmem>>, vector<128x2xf32>
    %cst = arith.constant dense<0.000000e+00> : vector<64x2xf32>
    %2 = tpu.matmul %0, %1, %cst {dimension_numbers = #tpu.dot_dimension_numbers<[1], [0], [0], [1], [0, 0, 1, 1], [], []>} : vector<64x128xf32>, vector<128x2xf32>, vector<64x2xf32> -> vector<64x2xf32>
    %c0_3 = arith.constant 0 : index
    %c0_4 = arith.constant 0 : index
    %3 = vector.load %arg3[%c0_3, %c0_4] : memref<4x64xf32, #tpu.memory_space<vmem>>, vector<4x64xf32>
    %cst_5 = arith.constant dense<0.000000e+00> : vector<4x2xf32>
    %4 = tpu.matmul %3, %2, %cst_5 {dimension_numbers = #tpu.dot_dimension_numbers<[1], [0], [0], [1], [0, 0, 1, 1], [], []>} : vector<4x64xf32>, vector<64x2xf32>, vector<4x2xf32> -> vector<4x2xf32>
    %c0_6 = arith.constant 0 : index
    %c0_7 = arith.constant 0 : index
    %5 = vector.load %arg4[%c0_6, %c0_7] : memref<4x1xf32, #tpu.memory_space<vmem>>, vector<4x1xf32>
    %6 = vector.broadcast %5 : vector<4x1xf32> to vector<4x2xf32>
    %7 = arith.addf %4, %6 : vector<4x2xf32>
    %8 = math.tanh %7 : vector<4x2xf32>
    %cst_8 = arith.constant dense<0.000000e+00> : vector<4xf32>
    %9 = vector.multi_reduction <add>, %8, %cst_8 [1] : vector<4x2xf32> to vector<4xf32>
    %10 = vector.shape_cast %9 : vector<4xf32> to vector<4x1xf32>
    %cst_9 = arith.constant 2.000000e+00 : f32
    %11 = vector.broadcast %cst_9 : f32 to vector<4x1xf32>
    %12 = arith.divf %10, %11 : vector<4x1xf32>
    %c0_10 = arith.constant 0 : index
    %c0_11 = arith.constant 0 : index
    %13 = vector.load %arg5[%c0_10, %c0_11] : memref<64x4xf32, #tpu.memory_space<vmem>>, vector<64x4xf32>
    %cst_12 = arith.constant dense<0.000000e+00> : vector<64x1xf32>
    %14 = tpu.matmul %13, %12, %cst_12 {dimension_numbers = #tpu.dot_dimension_numbers<[1], [0], [0], [1], [0, 0, 1, 1], [], []>} : vector<64x4xf32>, vector<4x1xf32>, vector<64x1xf32> -> vector<64x1xf32>
    %c0_13 = arith.constant 0 : index
    %c0_14 = arith.constant 0 : index
    %15 = vector.load %arg6[%c0_13, %c0_14] : memref<64x1xf32, #tpu.memory_space<vmem>>, vector<64x1xf32>
    %16 = arith.addf %14, %15 : vector<64x1xf32>
    %c0_15 = arith.constant 0 : index
    %c0_16 = arith.constant 0 : index
    %17 = vector.load %arg1[%c0_15, %c0_16] : memref<64x64xf32, #tpu.memory_space<vmem>>, vector<64x64xf32>
    %c0_17 = arith.constant 0 : index
    %c0_18 = arith.constant 0 : index
    %18 = vector.load %arg2[%c0_17, %c0_18] : memref<64x64xf32, #tpu.memory_space<vmem>>, vector<64x64xf32>
    %19 = vector.broadcast %16 : vector<64x1xf32> to vector<64x64xf32>
    %20 = arith.mulf %19, %18 : vector<64x64xf32>
    %cst_19 = arith.constant dense<0.000000e+00> : vector<64x64xf32>
    %21 = tpu.matmul %17, %20, %cst_19 {dimension_numbers = #tpu.dot_dimension_numbers<[1], [0], [0], [1], [0, 0, 1, 1], [], []>} : vector<64x64xf32>, vector<64x64xf32>, vector<64x64xf32> -> vector<64x64xf32>
    %cst_20 = arith.constant dense<0.000000e+00> : vector<64x128xf32>
    %22 = tpu.matmul %21, %0, %cst_20 {dimension_numbers = #tpu.dot_dimension_numbers<[1], [0], [0], [1], [0, 0, 1, 1], [], []>} : vector<64x64xf32>, vector<64x128xf32>, vector<64x128xf32> -> vector<64x128xf32>
    %c0_21 = arith.constant 0 : index
    %c0_22 = arith.constant 0 : index
    %23 = vector.load %arg0[%c0_21, %c0_22] : memref<128x64xf32, #tpu.memory_space<vmem>>, vector<128x64xf32>
    %cst_23 = arith.constant dense<0.000000e+00> : vector<128x128xf32>
    %24 = tpu.matmul %23, %22, %cst_23 {dimension_numbers = #tpu.dot_dimension_numbers<[1], [0], [0], [1], [0, 0, 1, 1], [], []>} : vector<128x64xf32>, vector<64x128xf32>, vector<128x128xf32> -> vector<128x128xf32>
    %cst_24 = arith.constant 0.000000e+00 : f32
    %25 = vector.broadcast %cst_24 : f32 to vector<128x128xf32>
    %26 = arith.maximumf %24, %25 : vector<128x128xf32>
    %c0_25 = arith.constant 0 : index
    %c0_26 = arith.constant 0 : index
    %27 = vector.load %arg9[%c0_25, %c0_26] : memref<128x128xf32, #tpu.memory_space<vmem>>, vector<128x128xf32>
    tpu.vector_store %arg9[%c0_25, %c0_26], %26 {strides = array<i32>} : memref<128x128xf32, #tpu.memory_space<vmem>>, vector<128x128xf32>,
    return
  }
}

</mosaic_0001>

<bundles_post_ra>
// kernel: my_graph_convolution.1
= control target key start
LH: loop header
LB: loop body
LE: loop exit
PB: predicated region body
PF: predicated region fallthrough
CT: control target
= control target key end

     0   :  { %v646_v31 = vmov 0   ;;  %vm104_vm0 = vcmask 523264   ;;  %vm129_vm1 = vcmask 11264   ;;  %v647_v40 = vmov 2.0   ;;  %s1029_s7 = inlined_call_operand.vmem [shape: f32[128,2], index: 7, kind: input, shape index: {}]   ;;  %s1030_s8 = inlined_call_operand.vmem [shape: f32[64,128], index: 8, kind: input, shape index: {}]   ;;  %s1031_s4 = inlined_call_operand.vmem [shape: f32[4,1], index: 4, kind: input, shape index: {}]   ;;  %s1032_s3 = inlined_call_operand.vmem [shape: f32[4,64], index: 3, kind: input, shape index: {}]   ;;  %s1033_s5 = inlined_call_operand.vmem [shape: f32[64,4], index: 5, kind: input, shape index: {}]   ;;  %s1034_s6 = inlined_call_operand.vmem [shape: f32[64,1], index: 6, kind: input, shape index: {}]   ;;  %s1035_s2 = inlined_call_operand.vmem [shape: f32[64,64], index: 2, kind: input, shape index: {}]   ;;  %s1036_s1 = inlined_call_operand.vmem [shape: f32[64,64], index: 1, kind: input, shape index: {}]   ;;  %s1037_s0 = inlined_call_operand.vmem [shape: f32[128,64], index: 0, kind: input, shape index: {}]   ;;  %s1038_s9 = inlined_call_operand.vmem [shape: f32[128,128], index: 9, kind: output, shape index: {}]  }
   0x1   :  { %v55_v0 = vld [vmem:[%s1029_s7 + $0x78] sm:$0xff]  ;;  %v54_v1 = vld [vmem:[%s1029_s7 + $0x70] sm:$0xff]  ;;  %v53_v2 = vld [vmem:[%s1029_s7 + $0x68] sm:$0xff]  ;;  %639 = vset.pattern.permute.xlu0 %v646_v31  ;;  %640 = vset.pattern.permute.xlu2 %v646_v31  ;;  %vm182_vm3 = vcmask 1043456   ;;  %vm157_vm4 = vcmask 31744  }
   0x2   :  { %56 = vmatpush.msra.mxu0 %v55_v0  ;;  %v52_v3 = vld [vmem:[%s1029_s7 + $0x60] sm:$0xff]  ;;  %v51_v4 = vld [vmem:[%s1029_s7 + $0x58] sm:$0xff]  ;;  %v50_v5 = vld [vmem:[%s1029_s7 + $0x50] sm:$0xff]  ;;  %641 = vset.pattern.permute.xlu1 %v646_v31 }
   0x3   :  { %v49_v6 = vld [vmem:[%s1029_s7 + $0x48] sm:$0xff]  ;;  %v48_v7 = vld [vmem:[%s1029_s7 + $0x40] sm:$0xff]  ;;  %v47_v8 = vld [vmem:[%s1029_s7 + $0x38] sm:$0xff] }
   0x4   :  { %57 = vmatpush.msra.mxu0 %v54_v1  ;;  %v46_v9 = vld [vmem:[%s1029_s7 + $0x30] sm:$0xff]  ;;  %v45_v10 = vld [vmem:[%s1029_s7 + $0x28] sm:$0xff]  ;;  %v44_v11 = vld [vmem:[%s1029_s7 + $0x20] sm:$0xff] }
   0x5   :  { %v43_v12 = vld [vmem:[%s1029_s7 + $0x18] sm:$0xff]  ;;  %v42_v13 = vld [vmem:[%s1029_s7 + $0x10] sm:$0xff]  ;;  %v41_v14 = vld [vmem:[%s1029_s7 + $0x8] sm:$0xff] }
   0x6   :  { %58 = vmatpush.msra.mxu0 %v53_v2  ;;  %v40_v15 = vld [vmem:[%s1029_s7] sm:$0xff]  ;;  %v755_v17 = vld [vmem:[%s1030_s8 + $0x8] sm:$0xff]  ;;  %v761_v18 = vld [vmem:[%s1030_s8 + $0x10] sm:$0xff] }
   0x7   :  { %v749_v16 = vld [vmem:[%s1030_s8] sm:$0xff]  ;;  %v767_v19 = vld [vmem:[%s1030_s8 + $0x18] sm:$0xff]  ;;  %v37_v21 = vld [vmem:[%s1030_s8 + $0x28] sm:$0xff] }
   0x8   :  { %59 = vmatpush.msra.mxu0 %v52_v3  ;;  %v773_v20 = vld [vmem:[%s1030_s8 + $0x20] sm:$0xff]  ;;  %v38_v22 = vld [vmem:[%s1030_s8 + $0x30] sm:$0xff]  ;;  %v39_v23 = vld [vmem:[%s1030_s8 + $0x38] sm:$0xff] }
   0x9   :  { %v98_v30 = vld [vmem:[%s1031_s4] sm:$0xf]  ;;  %v143_v49 = vld [vmem:[%s1033_s5 + $0x10] sm:$0xff]  ;;  %v144_v50 = vld [vmem:[%s1033_s5 + $0x18] sm:$0xff] }
   0xa   :  { %60 = vmatpush.msra.mxu0 %v51_v4  ;;  %101 = vperm.xlu0 %639, %v98_v30   ;;  %v97_v34 = vld [vmem:[%s1032_s3] sm:$0xf]  ;;  %v142_v53 = vld [vmem:[%s1033_s5 + $0x8] sm:$0xff]  ;;  %v147_v55 = vld [vmem:[%s1033_s5 + $0x30] sm:$0xff] }
   0xb   :  { %v141_v51 = vld [vmem:[%s1033_s5] sm:$0xff]  ;;  %v146_v54 = vld [vmem:[%s1033_s5 + $0x28] sm:$0xff]  ;;  %v148_v56 = vld [vmem:[%s1033_s5 + $0x38] sm:$0xff] }
   0xc   :  { %61 = vmatpush.msra.mxu0 %v50_v5  ;;  %v145_v52 = vld [vmem:[%s1033_s5 + $0x20] sm:$0xff]  ;;  %v154_v62 = vld [vmem:[%s1034_s6 + $0x28] sm:$0xff]  ;;  %v151_v1 = vld [vmem:[%s1034_s6 + $0x10] sm:$0xff] }
   0xd   :  { %v153_v59 = vld [vmem:[%s1034_s6 + $0x20] sm:$0xff]  ;;  %v155_v2 = vld [vmem:[%s1034_s6 + $0x30] sm:$0xff] }
   0xe   :  { %62 = vmatpush.msra.mxu0 %v49_v6  ;;  %v149_v6 = vld [vmem:[%s1034_s6] sm:$0xff]  ;;  %v237_v31 = vld [vmem:[%s1035_s2 + $0x10] sm:$0xff] }
  0x10   :  { %63 = vmatpush.msra.mxu0 %v48_v7 }
  0x12   :  { %64 = vmatpush.msra.mxu0 %v47_v8  ;;  %v156_v8 = vld [vmem:[%s1034_s6 + $0x38] sm:$0xff] }
  0x14   :  { %65 = vmatpush.msra.mxu0 %v46_v9 }
  0x16   :  { %66 = vmatpush.msra.mxu0 %v45_v10 }
  0x18   :  { %67 = vmatpush.msra.mxu0 %v44_v11 }
  0x1a   :  { %68 = vmatpush.msra.mxu0 %v43_v12  ;;  %v152_v12 = vld [vmem:[%s1034_s6 + $0x18] sm:$0xff] }
  0x1c   :  { %69 = vmatpush.msra.mxu0 %v42_v13 }
  0x1e   :  { %70 = vmatpush.msra.mxu0 %v41_v14  ;;  %v150_v14 = vld [vmem:[%s1034_s6 + $0x8] sm:$0xff] }
  0x20   :  { %71 = vmatpush.msra.mxu0 %v40_v15 }
  0x21   :  { %72 = vmatmul.f32.vlgmr.msra.gmra.mxu0 %v749_v16 }
  0x29   :  { %75 = vmatmul.f32.gmra.mxu0 %v755_v17 }
  0x31   :  { %78 = vmatmul.f32.gmra.mxu0 %v761_v18 }
  0x39   :  { %81 = vmatmul.f32.gmra.mxu0 %v767_v19 }
  0x41   :  { %84 = vmatmul.f32.gmra.mxu0 %v773_v20 }
  0x49   :  { %87 = vmatmul.f32.gmra.mxu0 %v37_v21 }
  0x51   :  { %90 = vmatmul.f32.gmra.mxu0 %v38_v22 }
  0x59   :  { %93 = vmatmul.f32.gmra.mxu0 %v39_v23 }
  0x7c   :  { %v102_v35 = vpop.permute.xlu0 %101 }
  0x9e   :  { %v73_v24 = vpop.f32.mrf.mxu0 }
  0xa6   :  { %v76_v25 = vpop.f32.mrf.mxu0 }
  0xae   :  { %v79_v26 = vpop.f32.mrf.mxu0 }
  0xb6   :  { %v82_v27 = vpop.f32.mrf.mxu0 }
  0xbe   :  { %v85_v28 = vpop.f32.mrf.mxu0 }
  0xc6   :  { %v88_v29 = vpop.f32.mrf.mxu0 }
  0xce   :  { %v91_v32 = vpop.f32.mrf.mxu0 }
  0xd6   :  { %v94_v33 = vpop.f32.mrf.mxu0 }
  0xd7   :  { %116 = vmatpush.msra.mxu1 %v94_v33 }
  0xd9   :  { %117 = vmatpush.msra.mxu1 %v91_v32 }
  0xdb   :  { %118 = vmatpush.msra.mxu1 %v88_v29 }
  0xdd   :  { %119 = vmatpush.msra.mxu1 %v85_v28  ;;  %v238_v28 = vld [vmem:[%s1035_s2 + $0x18] sm:$0xff] }
  0xdf   :  { %120 = vmatpush.msra.mxu1 %v82_v27 }
  0xe1   :  { %121 = vmatpush.msra.mxu1 %v79_v26  ;;  %v239_v26 = vld [vmem:[%s1035_s2 + $0x20] sm:$0xff] }
  0xe3   :  { %122 = vmatpush.msra.mxu1 %v76_v25 }
  0xe5   :  { %123 = vmatpush.msra.mxu1 %v73_v24  ;;  %v240_v24 = vld [vmem:[%s1035_s2 + $0x28] sm:$0xff] }
  0xe6   :  { %586 = vmatmul.msk.f32.vlgmr.msra.gmra.mxu1 %vm104_vm0, %v97_v34 }
 0x163   :  { %v125_v36 = vpop.f32.mrf.mxu1 }
 0x164   :  { %v126_v37 = vadd.f32 %v125_v36, %v102_v35  ;;  %v236_v35 = vld [vmem:[%s1035_s2 + $0x8] sm:$0xff] }
 0x166   :  { %642 = vtanh.f32 %v126_v37  ;;  %v235_v37 = vld [vmem:[%s1035_s2] sm:$0xff] }
 0x167   :  { %644 = vrcp.f32 %v647_v40 }
 0x16c   :  { %v643_v38 = vpop.eup %642 }
 0x16d   :  { %v130_v39 = vsel %vm129_vm1, %v643_v38, 0.0  ;;  %v645_v41 = vpop.eup %644 }
 0x16e   :  { %131 = vadd.xlane.f32.xlu0 %v130_v39  ;;  %v134_v42 = vmul.f32 2.0, %v645_v41  ;;  %vm138_vm2 = vweird.f32 %v645_v41 }
 0x170   :  { %v135_v43 = vsub.f32 1.0, %v134_v42  ;;  %v228_v42 = vld [vmem:[%s1036_s1 + $0x8] sm:$0xff] }
 0x172   :  { %v136_v44 = vmul.f32 %v645_v41, %v135_v43  ;;  %v229_v43 = vld [vmem:[%s1036_s1 + $0x10] sm:$0xff] }
 0x174   :  { %v137_v45 = vadd.f32 %v645_v41, %v136_v44  ;;  %v230_v44 = vld [vmem:[%s1036_s1 + $0x18] sm:$0xff] }
 0x176   :  { %v139_v46 = vsel %vm138_vm2, %v645_v41, %v137_v45  ;;  %v227_v41 = vld [vmem:[%s1036_s1] sm:$0xff] }
 0x177   :  { %v231_v45 = vld [vmem:[%s1036_s1 + $0x20] sm:$0xff] }
 0x1e1   :  { %v132_v47 = vpop.xlane.xlu0 %131 }
 0x1e2   :  { %v140_v48 = vmul.f32 %v139_v46, %v132_v47  ;;  %v232_v46 = vld [vmem:[%s1036_s1 + $0x28] sm:$0xff]  ;;  %v233_v47 = vld [vmem:[%s1036_s1 + $0x30] sm:$0xff] }
 0x1e4   :  { %587 = vmatpush.msk.msrb.mxu1 %vm182_vm3, %v140_v48  ;;  %628 = vmatpush.msk.msra.mxu3 %vm182_vm3, %v140_v48  ;;  %v234_v48 = vld [vmem:[%s1036_s1 + $0x38] sm:$0xff] }
 0x1e5   :  { %590 = vmatmul.msk.f32.vlgmr.msra.gmra.mxu3 %vm157_vm4, %v143_v49  ;;  %588 = vmatmul.msk.f32.vlgmr.msrb.gmra.mxu1 %vm157_vm4, %v141_v51 }
 0x1e6   :  { %388 = vmatpush.msra.mxu1 %v39_v23 }
 0x1e8   :  { %389 = vmatpush.msra.mxu1 %v38_v22 }
 0x1ea   :  { %390 = vmatpush.msra.mxu1 %v37_v21  ;;  %v241_v21 = vld [vmem:[%s1035_s2 + $0x30] sm:$0xff] }
 0x1ec   :  { %391 = vmatpush.msra.mxu1 %v773_v20  ;;  %v242_v20 = vld [vmem:[%s1035_s2 + $0x38] sm:$0xff] }
 0x1ed   :  { %591 = vmatmul.msk.f32.gmra.mxu3 %vm157_vm4, %v144_v50  ;;  %589 = vmatmul.msk.f32.gmra.mxu1 %vm157_vm4, %v142_v53 }
 0x1ee   :  { %392 = vmatpush.msra.mxu1 %v767_v19 }
 0x1f0   :  { %393 = vmatpush.msra.mxu1 %v761_v18 }
 0x1f2   :  { %394 = vmatpush.msra.mxu1 %v755_v17 }
 0x1f4   :  { %395 = vmatpush.msra.mxu1 %v749_v16 }
 0x1f5   :  { %592 = vmatmul.msk.f32.gmra.mxu3 %vm157_vm4, %v145_v52 }
 0x1fd   :  { %593 = vmatmul.msk.f32.gmra.mxu3 %vm157_vm4, %v146_v54 }
 0x205   :  { %594 = vmatmul.msk.f32.gmra.mxu3 %vm157_vm4, %v147_v55 }
 0x20d   :  { %595 = vmatmul.msk.f32.gmra.mxu3 %vm157_vm4, %v148_v56 }
 0x262   :  { %v203_v7 = vpop.f32.mrf.mxu1 }
 0x263   :  { %v204_v9 = vadd.f32 %v203_v7, %v149_v6  ;;  %v429_v6 = vld [vmem:[%s1037_s0 + $0x40] sm:$0xff]  ;;  %v430_v7 = vld [vmem:[%s1037_s0 + $0x48] sm:$0xff] }
 0x268   :  { %v209_v57 = vpop.f32.mrf.mxu3 }
 0x269   :  { %v210_v4 = vadd.f32 %v209_v57, %v151_v1  ;;  %v424_v1 = vld [vmem:[%s1037_s0 + $0x18] sm:$0xff] }
 0x26a   :  { %v206_v15 = vpop.f32.mrf.mxu1 }
 0x26b   :  { %v207_v16 = vadd.f32 %v206_v15, %v150_v14  ;;  %v434_v14 = vld [vmem:[%s1037_s0 + $0x68] sm:$0xff]  ;;  %v435_v15 = vld [vmem:[%s1037_s0 + $0x70] sm:$0xff] }
 0x270   :  { %v212_v58 = vpop.f32.mrf.mxu3 }
 0x271   :  { %v213_v13 = vadd.f32 %v212_v58, %v152_v12  ;;  %v423_v12 = vld [vmem:[%s1037_s0 + $0x10] sm:$0xff] }
 0x278   :  { %v215_v60 = vpop.f32.mrf.mxu3 }
 0x279   :  { %v216_v61 = vadd.f32 %v215_v60, %v153_v59 }
 0x27b   :  { %265 = vperm.xlu2 %640, %v216_v61  }
 0x280   :  { %v218_v63 = vpop.f32.mrf.mxu3 }
 0x281   :  { %v219_v0 = vadd.f32 %v218_v63, %v154_v62 }
 0x283   :  { %270 = vperm.xlu2 %640, %v219_v0  }
 0x288   :  { %v221_v3 = vpop.f32.mrf.mxu3 }
 0x289   :  { %v222_v5 = vadd.f32 %v221_v3, %v155_v2  ;;  %v425_v2 = vld [vmem:[%s1037_s0 + $0x20] sm:$0xff]  ;;  %v426_v3 = vld [vmem:[%s1037_s0 + $0x28] sm:$0xff] }
 0x28b   :  { %275 = vperm.xlu1 %641, %v222_v5   ;;  %255 = vperm.xlu2 %640, %v210_v4   ;;  %v427_v4 = vld [vmem:[%s1037_s0 + $0x30] sm:$0xff]  ;;  %v428_v5 = vld [vmem:[%s1037_s0 + $0x38] sm:$0xff] }
 0x290   :  { %v224_v10 = vpop.f32.mrf.mxu3 }
 0x291   :  { %v225_v11 = vadd.f32 %v224_v10, %v156_v8  ;;  %v421_v8 = vld [vmem:[%s1037_s0] sm:$0xff]  ;;  %v422_v10 = vld [vmem:[%s1037_s0 + $0x8] sm:$0xff] }
 0x293   :  { %280 = vperm.xlu1 %641, %v225_v11   ;;  %245 = vperm.xlu2 %640, %v204_v9   ;;  %v431_v9 = vld [vmem:[%s1037_s0 + $0x50] sm:$0xff]  ;;  %v432_v11 = vld [vmem:[%s1037_s0 + $0x58] sm:$0xff] }
 0x29b   :  { %260 = vperm.xlu1 %641, %v213_v13   ;;  %v433_v13 = vld [vmem:[%s1037_s0 + $0x60] sm:$0xff] }
 0x2a3   :  { %250 = vperm.xlu1 %641, %v207_v16   ;;  %v436_v16 = vld [vmem:[%s1037_s0 + $0x78] sm:$0xff] }
 0x2d5   :  { %v266_v17 = vpop.permute.xlu2 %265 }
 0x2d6   :  { %v287_v29 = vmul.f32 %v266_v17, %v239_v26 }
 0x2dd   :  { %v271_v19 = vpop.permute.xlu2 %270 }
 0x2de   :  { %v288_v27 = vmul.f32 %v271_v19, %v240_v24 }
 0x2e5   :  { %v256_v30 = vpop.permute.xlu2 %255 }
 0x2e6   :  { %v285_v34 = vmul.f32 %v256_v30, %v237_v31 }
 0x2ed   :  { %v246_v36 = vpop.permute.xlu2 %245 }
 0x2ee   :  { %v283_v40 = vmul.f32 %v246_v36, %v235_v37 }
 0x2fd   :  { %v276_v18 = vpop.permute.xlu1 %275 }
 0x2fe   :  { %v289_v25 = vmul.f32 %v276_v18, %v241_v21 }
 0x305   :  { %v281_v22 = vpop.permute.xlu1 %280 }
 0x306   :  { %v290_v23 = vmul.f32 %v281_v22, %v242_v20 }
 0x308   :  { %323 = vmatpush.msrb.mxu3 %v290_v23 }
 0x30a   :  { %324 = vmatpush.msrb.mxu3 %v289_v25 }
 0x30c   :  { %325 = vmatpush.msrb.mxu3 %v288_v27 }
 0x30d   :  { %v261_v32 = vpop.permute.xlu1 %260 }
 0x30e   :  { %v286_v33 = vmul.f32 %v261_v32, %v238_v28  ;;  %326 = vmatpush.msrb.mxu3 %v287_v29 }
 0x310   :  { %327 = vmatpush.msrb.mxu3 %v286_v33 }
 0x312   :  { %328 = vmatpush.msrb.mxu3 %v285_v34 }
 0x315   :  { %v251_v38 = vpop.permute.xlu1 %250 }
 0x316   :  { %v284_v39 = vmul.f32 %v251_v38, %v236_v35 }
 0x318   :  { %329 = vmatpush.msrb.mxu3 %v284_v39 }
 0x31a   :  { %330 = vmatpush.msrb.mxu3 %v283_v40 }
 0x31b   :  { %596 = vmatmul.msk.f32.vlgmr.msrb.gmra.mxu3 %vm104_vm0, %v227_v41 }
 0x323   :  { %597 = vmatmul.msk.f32.gmra.mxu3 %vm104_vm0, %v228_v42 }
 0x32b   :  { %598 = vmatmul.msk.f32.gmra.mxu3 %vm104_vm0, %v229_v43 }
 0x333   :  { %599 = vmatmul.msk.f32.gmra.mxu3 %vm104_vm0, %v230_v44 }
 0x33b   :  { %600 = vmatmul.msk.f32.gmra.mxu3 %vm104_vm0, %v231_v45 }
 0x343   :  { %601 = vmatmul.msk.f32.gmra.mxu3 %vm104_vm0, %v232_v46 }
 0x34b   :  { %602 = vmatmul.msk.f32.gmra.mxu3 %vm104_vm0, %v233_v47 }
 0x353   :  { %603 = vmatmul.msk.f32.gmra.mxu3 %vm104_vm0, %v234_v48 }
 0x39e   :  { %v332_v49 = vpop.f32.mrf.mxu3 }
 0x39f   :  { %604 = vmatmul.msk.f32.vlgmr.msra.gmra.mxu1 %vm104_vm0, %v332_v49 }
 0x3a6   :  { %v335_v50 = vpop.f32.mrf.mxu3 }
 0x3a7   :  { %605 = vmatmul.msk.f32.gmra.mxu1 %vm104_vm0, %v335_v50 }
 0x3ae   :  { %v338_v51 = vpop.f32.mrf.mxu3 }
 0x3af   :  { %606 = vmatmul.msk.f32.gmra.mxu1 %vm104_vm0, %v338_v51 }
 0x3b6   :  { %v341_v52 = vpop.f32.mrf.mxu3 }
 0x3b7   :  { %607 = vmatmul.msk.f32.gmra.mxu1 %vm104_vm0, %v341_v52 }
 0x3be   :  { %v344_v53 = vpop.f32.mrf.mxu3 }
 0x3bf   :  { %608 = vmatmul.msk.f32.gmra.mxu1 %vm104_vm0, %v344_v53 }
 0x3c6   :  { %v347_v54 = vpop.f32.mrf.mxu3 }
 0x3c7   :  { %609 = vmatmul.msk.f32.gmra.mxu1 %vm104_vm0, %v347_v54 }
 0x3ce   :  { %v350_v55 = vpop.f32.mrf.mxu3 }
 0x3cf   :  { %610 = vmatmul.msk.f32.gmra.mxu1 %vm104_vm0, %v350_v55 }
 0x3d6   :  { %v353_v56 = vpop.f32.mrf.mxu3 }
 0x3d7   :  { %611 = vmatmul.msk.f32.gmra.mxu1 %vm104_vm0, %v353_v56 }
 0x41c   :  { %v397_v57 = vpop.f32.mrf.mxu1 }
 0x424   :  { %v400_v58 = vpop.f32.mrf.mxu1 }
 0x42c   :  { %v403_v59 = vpop.f32.mrf.mxu1 }
 0x434   :  { %v406_v60 = vpop.f32.mrf.mxu1 }
 0x43c   :  { %v409_v61 = vpop.f32.mrf.mxu1 }
 0x444   :  { %v412_v62 = vpop.f32.mrf.mxu1 }
 0x44c   :  { %v415_v63 = vpop.f32.mrf.mxu1 }
 0x454   :  { %v418_v0 = vpop.f32.mrf.mxu1 }
 0x455   :  { %493 = vmatpush.msrb.mxu0 %v418_v0  ;;  %629 = vmatpush.msra.mxu2 %v418_v0 }
 0x457   :  { %494 = vmatpush.msrb.mxu0 %v415_v63  ;;  %630 = vmatpush.msra.mxu2 %v415_v63 }
 0x459   :  { %495 = vmatpush.msrb.mxu0 %v412_v62  ;;  %631 = vmatpush.msra.mxu2 %v412_v62 }
 0x45b   :  { %496 = vmatpush.msrb.mxu0 %v409_v61  ;;  %632 = vmatpush.msra.mxu2 %v409_v61 }
 0x45d   :  { %497 = vmatpush.msrb.mxu0 %v406_v60  ;;  %633 = vmatpush.msra.mxu2 %v406_v60 }
 0x45f   :  { %498 = vmatpush.msrb.mxu0 %v403_v59  ;;  %634 = vmatpush.msra.mxu2 %v403_v59 }
 0x461   :  { %499 = vmatpush.msrb.mxu0 %v400_v58  ;;  %635 = vmatpush.msra.mxu2 %v400_v58 }
 0x463   :  { %500 = vmatpush.msrb.mxu0 %v397_v57  ;;  %636 = vmatpush.msra.mxu2 %v397_v57 }
 0x464   :  { %615 = vmatmul.msk.f32.vlgmr.msra.gmra.mxu2 %vm104_vm0, %v424_v1  ;;  %612 = vmatmul.msk.f32.vlgmr.msrb.gmra.mxu0 %vm104_vm0, %v421_v8 }
 0x46c   :  { %616 = vmatmul.msk.f32.gmra.mxu2 %vm104_vm0, %v425_v2  ;;  %613 = vmatmul.msk.f32.gmra.mxu0 %vm104_vm0, %v422_v10 }
 0x474   :  { %617 = vmatmul.msk.f32.gmra.mxu2 %vm104_vm0, %v426_v3  ;;  %614 = vmatmul.msk.f32.gmra.mxu0 %vm104_vm0, %v423_v12 }
 0x47c   :  { %618 = vmatmul.msk.f32.gmra.mxu2 %vm104_vm0, %v427_v4 }
 0x484   :  { %619 = vmatmul.msk.f32.gmra.mxu2 %vm104_vm0, %v428_v5 }
 0x48c   :  { %620 = vmatmul.msk.f32.gmra.mxu2 %vm104_vm0, %v429_v6 }
 0x494   :  { %621 = vmatmul.msk.f32.gmra.mxu2 %vm104_vm0, %v430_v7 }
 0x49c   :  { %622 = vmatmul.msk.f32.gmra.mxu2 %vm104_vm0, %v431_v9 }
 0x4a4   :  { %623 = vmatmul.msk.f32.gmra.mxu2 %vm104_vm0, %v432_v11 }
 0x4ac   :  { %624 = vmatmul.msk.f32.gmra.mxu2 %vm104_vm0, %v433_v13 }
 0x4b4   :  { %625 = vmatmul.msk.f32.gmra.mxu2 %vm104_vm0, %v434_v14 }
 0x4bc   :  { %626 = vmatmul.msk.f32.gmra.mxu2 %vm104_vm0, %v435_v15 }
 0x4c4   :  { %627 = vmatmul.msk.f32.gmra.mxu2 %vm104_vm0, %v436_v16 }
 0x4e1   :  { %v502_v29 = vpop.f32.mrf.mxu0 }
 0x4e2   :  { %v550_v30 = vmax.f32 %v502_v29, 0.0 }
 0x4e4   :  { %566 = vst [vmem:[%s1038_s9] sm:$0xff] %v550_v30 }
 0x4e7   :  { %v511_v17 = vpop.f32.mrf.mxu2 }
 0x4e8   :  { %v553_v18 = vmax.f32 %v511_v17, 0.0 }
 0x4e9   :  { %v505_v33 = vpop.f32.mrf.mxu0 }
 0x4ea   :  { %569 = vst [vmem:[%s1038_s9 + $0x18] sm:$0xff] %v553_v18  ;;  %v551_v34 = vmax.f32 %v505_v33, 0.0 }
 0x4ec   :  { %567 = vst [vmem:[%s1038_s9 + $0x8] sm:$0xff] %v551_v34 }
 0x4ef   :  { %v514_v19 = vpop.f32.mrf.mxu2 }
 0x4f0   :  { %v554_v20 = vmax.f32 %v514_v19, 0.0 }
 0x4f1   :  { %v508_v37 = vpop.f32.mrf.mxu0 }
 0x4f2   :  { %570 = vst [vmem:[%s1038_s9 + $0x20] sm:$0xff] %v554_v20  ;;  %v552_v38 = vmax.f32 %v508_v37, 0.0 }
 0x4f4   :  { %568 = vst [vmem:[%s1038_s9 + $0x10] sm:$0xff] %v552_v38 }
 0x4f7   :  { %v517_v21 = vpop.f32.mrf.mxu2 }
 0x4f8   :  { %v555_v22 = vmax.f32 %v517_v21, 0.0 }
 0x4fa   :  { %571 = vst [vmem:[%s1038_s9 + $0x28] sm:$0xff] %v555_v22 }
 0x4ff   :  { %v520_v23 = vpop.f32.mrf.mxu2 }
 0x500   :  { %v556_v24 = vmax.f32 %v520_v23, 0.0 }
 0x502   :  { %572 = vst [vmem:[%s1038_s9 + $0x30] sm:$0xff] %v556_v24 }
 0x507   :  { %v523_v25 = vpop.f32.mrf.mxu2 }
 0x508   :  { %v557_v26 = vmax.f32 %v523_v25, 0.0 }
 0x50a   :  { %573 = vst [vmem:[%s1038_s9 + $0x38] sm:$0xff] %v557_v26 }
 0x50f   :  { %v526_v27 = vpop.f32.mrf.mxu2 }
 0x510   :  { %v558_v28 = vmax.f32 %v526_v27, 0.0 }
 0x512   :  { %574 = vst [vmem:[%s1038_s9 + $0x40] sm:$0xff] %v558_v28 }
 0x517   :  { %v529_v31 = vpop.f32.mrf.mxu2 }
 0x518   :  { %v559_v32 = vmax.f32 %v529_v31, 0.0 }
 0x51a   :  { %575 = vst [vmem:[%s1038_s9 + $0x48] sm:$0xff] %v559_v32 }
 0x51f   :  { %v532_v35 = vpop.f32.mrf.mxu2 }
 0x520   :  { %v560_v36 = vmax.f32 %v532_v35, 0.0 }
 0x522   :  { %576 = vst [vmem:[%s1038_s9 + $0x50] sm:$0xff] %v560_v36 }
 0x527   :  { %v535_v39 = vpop.f32.mrf.mxu2 }
 0x528   :  { %v561_v40 = vmax.f32 %v535_v39, 0.0 }
 0x52a   :  { %577 = vst [vmem:[%s1038_s9 + $0x58] sm:$0xff] %v561_v40 }
 0x52f   :  { %v538_v41 = vpop.f32.mrf.mxu2 }
 0x530   :  { %v562_v42 = vmax.f32 %v538_v41, 0.0 }
 0x532   :  { %578 = vst [vmem:[%s1038_s9 + $0x60] sm:$0xff] %v562_v42 }
 0x537   :  { %v541_v43 = vpop.f32.mrf.mxu2 }
 0x538   :  { %v563_v44 = vmax.f32 %v541_v43, 0.0 }
 0x53a   :  { %579 = vst [vmem:[%s1038_s9 + $0x68] sm:$0xff] %v563_v44 }
 0x53f   :  { %v544_v45 = vpop.f32.mrf.mxu2 }
 0x540   :  { %v564_v46 = vmax.f32 %v544_v45, 0.0 }
 0x542   :  { %580 = vst [vmem:[%s1038_s9 + $0x70] sm:$0xff] %v564_v46 }
 0x547   :  { %v547_v47 = vpop.f32.mrf.mxu2 }
 0x548   :  { %v565_v48 = vmax.f32 %v547_v47, 0.0 }
 0x54a   :  { %581 = vst [vmem:[%s1038_s9 + $0x78] sm:$0xff] %v565_v48 }

</bundles_post_ra>
